<compile_context>
chip_gen: v7x
topology: tpu7x:2x2x1
jax: 0.10.0
libtpu: 0.0.40
codegen_flags: <defaults>
</compile_context>

<pallas_src>
import jax
import jax.numpy as jnp
import numpy as np
from jax.experimental import pallas as pl
from jax.experimental.pallas import tpu as pltpu


def _greedy_loss_kernel(scores_ref, targets_ref, loss_ref):
    """One row tile: per-row CE = logsumexp_l(scores) - scores[target]."""
    scores = scores_ref[...].astype(jnp.float32)                      # (rt, L)
    tgt = targets_ref[...]                                            # (rt, 1) int32

    # Stable row-wise logsumexp over the label (lane) axis.
    m = jnp.max(scores, axis=-1, keepdims=True)                       # (rt, 1)
    lse = jnp.log(jnp.sum(jnp.exp(scores - m), axis=-1, keepdims=True)) + m

    # Gather scores[r, targets[r]] via iota/compare/select (gather-free);
    # tgt is (rt, 1) so the compare is a lane broadcast, no relayout.
    lab = jax.lax.broadcasted_iota(jnp.int32, scores.shape, 1)        # (rt, L)
    gold = jnp.sum(jnp.where(lab == tgt, scores, 0.0), axis=-1, keepdims=True)

    loss_ref[...] = lse - gold                                        # (rt, 1)


def _pick_row_tile(n_rows, n_labels, itemsize, budget_bytes=8 << 20):
    """Largest multiple-of-8 row tile whose scores tile fits ~budget_bytes."""
    rows = budget_bytes // max(1, n_labels * itemsize)
    rows = max(8, (rows // 8) * 8)
    rows_up = ((n_rows + 7) // 8) * 8
    return min(rows, rows_up)


def greedy_loss(scores, targets, *, row_tile=None, vmem_limit_bytes=32 << 20):
    """Pallas-backed GreedyLoss.forward(scores, targets)."""
    B, T, L = scores.shape
    R = B * T
    scores2 = scores.reshape(R, L)
    targets2 = targets.reshape(R, 1).astype(jnp.int32)

    if row_tile is None:
        row_tile = _pick_row_tile(R, L, scores2.dtype.itemsize)
    assert row_tile % 8 == 0, row_tile

    grid = (pl.cdiv(R, row_tile),)
    per_row = pl.pallas_call(
        _greedy_loss_kernel,
        out_shape=jax.ShapeDtypeStruct((R, 1), jnp.float32),
        grid=grid,
        in_specs=[
            pl.BlockSpec((row_tile, L), lambda i: (i, 0)),   # scores rows
            pl.BlockSpec((row_tile, 1), lambda i: (i, 0)),   # int32 targets
        ],
        out_specs=pl.BlockSpec((row_tile, 1), lambda i: (i, 0)),
        compiler_params=pltpu.CompilerParams(
            dimension_semantics=("parallel",),               # no carried state
            vmem_limit_bytes=vmem_limit_bytes,
        ),
    )(scores2, targets2)
    # Tiny (R,1) -> scalar reduction + 1/(B*T) scale done in plain JAX.
    return jnp.mean(per_row)


def greedy_loss_ref(scores, targets):
    """Pure-JAX reference mirroring the PyTorch module exactly."""
    B, T, L = scores.shape
    logits = scores.reshape(B * T, L).astype(jnp.float32)
    tgt = targets.reshape(B * T)
    lse = jax.scipy.special.logsumexp(logits, axis=-1)
    gold = jnp.take_along_axis(logits, tgt[:, None], axis=1)[:, 0]
    return jnp.mean(lse - gold)


if __name__ == "__main__":
    # Small shapes consistent with the module: B sequences of length T, L labels.
    B, T, L = 16, 8, 128
    key = jax.random.PRNGKey(0)
    k_scores, k_targets = jax.random.split(key)
    scores = jax.random.normal(k_scores, (B, T, L), dtype=jnp.float32)
    targets = jax.random.randint(k_targets, (B, T), 0, L, dtype=jnp.int32)

    # f32, multi-step parallel grid (row_tile=64 -> 2 tiles of 64 rows each).
    loss = greedy_loss(scores, targets, row_tile=64)
    jax.block_until_ready(loss)
    np.testing.assert_allclose(np.asarray(loss),
                               np.asarray(greedy_loss_ref(scores, targets)),
                               rtol=1e-5, atol=1e-5)

    # bf16 streaming (kernel upcasts to f32): same values, half the HBM bytes.
    scores_bf16 = scores.astype(jnp.bfloat16)
    loss_bf16 = greedy_loss(scores_bf16, targets)
    jax.block_until_ready(loss_bf16)
    np.testing.assert_allclose(
        np.asarray(loss_bf16),
        np.asarray(greedy_loss_ref(scores_bf16.astype(jnp.float32), targets)),
        rtol=1e-5, atol=1e-5)

    # Ragged case: B*T = 45 rows, row_tile = 16 -> masked partial last tile.
    B2, T2, L2 = 5, 9, 64
    k2s, k2t = jax.random.split(jax.random.PRNGKey(1))
    scores_r = jax.random.normal(k2s, (B2, T2, L2), dtype=jnp.float32)
    targets_r = jax.random.randint(k2t, (B2, T2), 0, L2, dtype=jnp.int32)
    loss_r = greedy_loss(scores_r, targets_r, row_tile=16)
    jax.block_until_ready(loss_r)
    np.testing.assert_allclose(np.asarray(loss_r),
                               np.asarray(greedy_loss_ref(scores_r, targets_r)),
                               rtol=1e-5, atol=1e-5)

    print("KERNEL_OK")
</pallas_src>

<mosaic_0001>
module attributes {stable_mosaic.version = 11 : i64} {
  func.func @_greedy_loss_kernel(%arg0: i32, %arg1: memref<64x128xf32, #tpu.memory_space<vmem>>, %arg2: memref<64x1xi32, #tpu.memory_space<vmem>>, %arg3: memref<64x1xf32, #tpu.memory_space<vmem>>) attributes {dimension_semantics = [#tpu.dimension_semantics<parallel>], iteration_bounds = array<i64: 2>, scalar_prefetch = 0 : i64, scratch_operands = 0 : i64, tpu.core_type = #tpu.core_type<tc>, window_params = [{transform_indices = @transform_0, window_bounds = array<i64: 64, 128>}, {transform_indices = @transform_1, window_bounds = array<i64: 64, 1>}, {transform_indices = @transform_2, window_bounds = array<i64: 64, 1>}]} {
    %c0 = arith.constant 0 : index
    %c0_0 = arith.constant 0 : index
    %0 = vector.load %arg1[%c0, %c0_0] : memref<64x128xf32, #tpu.memory_space<vmem>>, vector<64x128xf32>
    %c0_1 = arith.constant 0 : index
    %c0_2 = arith.constant 0 : index
    %1 = vector.load %arg2[%c0_1, %c0_2] : memref<64x1xi32, #tpu.memory_space<vmem>>, vector<64x1xi32>
    %cst = arith.constant dense<0xFF800000> : vector<64xf32>
    %2 = vector.multi_reduction <maximumf>, %0, %cst [1] : vector<64x128xf32> to vector<64xf32>
    %3 = vector.shape_cast %2 : vector<64xf32> to vector<64x1xf32>
    %4 = vector.broadcast %3 : vector<64x1xf32> to vector<64x128xf32>
    %5 = arith.subf %0, %4 : vector<64x128xf32>
    %6 = math.exp %5 : vector<64x128xf32>
    %cst_3 = arith.constant dense<0.000000e+00> : vector<64xf32>
    %7 = vector.multi_reduction <add>, %6, %cst_3 [1] : vector<64x128xf32> to vector<64xf32>
    %8 = vector.shape_cast %7 : vector<64xf32> to vector<64x1xf32>
    %9 = math.log %8 : vector<64x1xf32>
    %10 = arith.addf %9, %3 : vector<64x1xf32>
    %11 = tpu.iota {dimensions = array<i32: 1>} : vector<64x128xi32>
    %12 = vector.broadcast %1 : vector<64x1xi32> to vector<64x128xi32>
    %13 = arith.cmpi eq, %11, %12 : vector<64x128xi32>
    %cst_4 = arith.constant 0.000000e+00 : f32
    %14 = vector.broadcast %cst_4 : f32 to vector<64x128xf32>
    %15 = arith.select %13, %0, %14 : vector<64x128xi1>, vector<64x128xf32>
    %cst_5 = arith.constant dense<0.000000e+00> : vector<64xf32>
    %16 = vector.multi_reduction <add>, %15, %cst_5 [1] : vector<64x128xf32> to vector<64xf32>
    %17 = vector.shape_cast %16 : vector<64xf32> to vector<64x1xf32>
    %18 = arith.subf %10, %17 : vector<64x1xf32>
    %c0_6 = arith.constant 0 : index
    %c0_7 = arith.constant 0 : index
    %19 = vector.load %arg3[%c0_6, %c0_7] : memref<64x1xf32, #tpu.memory_space<vmem>>, vector<64x1xf32>
    tpu.vector_store %arg3[%c0_6, %c0_7], %18 {strides = array<i32>} : memref<64x1xf32, #tpu.memory_space<vmem>>, vector<64x1xf32>,
    return
  }
  func.func @transform_0(%arg0: i32) -> (i32, i32) {
    %c0_i32 = arith.constant 0 : i32
    %c0_i32_0 = arith.constant 0 : i32
    return %arg0, %c0_i32 : i32, i32
  }
  func.func @transform_1(%arg0: i32) -> (i32, i32) {
    %c0_i32 = arith.constant 0 : i32
    %c0_i32_0 = arith.constant 0 : i32
    return %arg0, %c0_i32 : i32, i32
  }
  func.func @transform_2(%arg0: i32) -> (i32, i32) {
    %c0_i32 = arith.constant 0 : i32
    %c0_i32_0 = arith.constant 0 : i32
    return %arg0, %c0_i32 : i32, i32
  }
}

</mosaic_0001>

<bundles_post_ra>
// kernel: tpu_custom_call.1
= control target key start
LH: loop header
LB: loop body
LE: loop exit
PB: predicated region body
PF: predicated region fallthrough
CT: control target
= control target key end

     0   :  { %s488_s9 = smov 0   ;;  %s603_s0 = inlined_call_operand.vmem [shape: f32[128,128], index: 0, kind: input, shape index: {}]   ;;  %s604_s1 = inlined_call_operand.vmem [shape: s32[128,1], index: 1, kind: input, shape index: {}]   ;;  %s605_s2 = inlined_call_operand.vmem [shape: f32[128,1], index: 2, kind: output, shape index: {}]  }
   0x1 LB: > { %s408_s10 = sadd.s32 4294967295, %s470_s9   ;;  %p412_p0 = scmp.ge.s32.totalorder %s470_s9, 1  ;;  %s470_s9 = sphi %s488_s9, %s12_s9  }
   0x2   : > { %p124_p1 = scmp.lt.s32.totalorder %s470_s9, 3 }
   0x4   : > { %p125_p2 = pnand %p412_p0, %p124_p1 }
   0x5   : > { %s413_s11 = sshll.u32 (!%p125_p2), %s408_s10, 3  ;;  %v472_v0 = vmov (!%p125_p2), 0   ;;  %v265_v46 = vlaneseq (!%p125_p2)  ;;  %vm331_vm8 = vcmask (!%p125_p2), 7168  }
   0x6   : > { %128 = sbr.rel (%p125_p2) target bundleno = 352 (0x160), region = 28  ;;  %p152_p3 = scmp.lt.s32.totalorder (!%p125_p2), %s413_s11, 15  ;;  %431 = vset.pattern.permute.xlu1 (!%p125_p2), %v472_v0  ;;  %430 = vset.pattern.permute.xlu0 (!%p125_p2), %v472_v0 }
   0x7   : > { %v266_v50 = vand.u32 (!%p125_p2), 127, %v265_v46 }
   0xd   : > { %s607_s11 = smov (!%p152_p3, %s413_s11), 15 }
   0xe   : > { %s496_s12 = sshll.u32 %s607_s11, 3 }
   0xf   : > { %s155_s15 = scalar_lea.vmem %s603_s0, %s496_s12  ;;  %s161_s18 = scalar_lea.vmem %s604_s1, %s496_s12 }
  0x10   : > { %v502_v1 = vld [vmem:[%s155_s15 + $0x10] sm:$0xff]  ;;  %v504_v2 = vld [vmem:[%s155_s15] sm:$0xff]  ;;  %v508_v3 = vld [vmem:[%s155_s15 + $0x18] sm:$0xff]  ;;  %s577_s21 = scalar_lea.vmem %s605_s2, %s496_s12 }
  0x11   : > { %189 = vmax.xlane.f32.xlu1 %v502_v1  ;;  %185 = vmax.xlane.f32.xlu0 %v504_v2  ;;  %v510_v4 = vld [vmem:[%s155_s15 + $0x8] sm:$0xff]  ;;  %v516_v6 = vld [vmem:[%s155_s15 + $0x20] sm:$0xff]  ;;  %v520_v7 = vld [vmem:[%s155_s15 + $0x38] sm:$0xff] }
  0x12   : > { %v514_v5 = vld [vmem:[%s155_s15 + $0x28] sm:$0xff]  ;;  %v522_v8 = vld [vmem:[%s155_s15 + $0x30] sm:$0xff]  ;;  %v177_v11 = vld [vmem:[%s161_s18] sm:$0xff] }
  0x13   : > { %v178_v9 = vld [vmem:[%s161_s18 + $0x8] sm:$0xff]  ;;  %v179_v10 = vld [vmem:[%s161_s18 + $0x10] sm:$0xff]  ;;  %v180_v12 = vld [vmem:[%s161_s18 + $0x18] sm:$0xff] }
  0x14   : > { %v181_v13 = vld [vmem:[%s161_s18 + $0x20] sm:$0xff]  ;;  %v182_v14 = vld [vmem:[%s161_s18 + $0x28] sm:$0xff]  ;;  %v183_v15 = vld [vmem:[%s161_s18 + $0x30] sm:$0xff] }
  0x15   : > { %191 = vmax.xlane.f32.xlu1 %v508_v3  ;;  %187 = vmax.xlane.f32.xlu0 %v510_v4  ;;  %v184_v16 = vld [vmem:[%s161_s18 + $0x38] sm:$0xff] }
  0x19   : > { %195 = vmax.xlane.f32.xlu1 %v514_v5  ;;  %193 = vmax.xlane.f32.xlu0 %v516_v6 }
  0x1d   : > { %199 = vmax.xlane.f32.xlu1 %v520_v7  ;;  %197 = vmax.xlane.f32.xlu0 %v522_v8 }
  0x2e   : > { %271 = vperm.xlu1 %431, %v178_v9  }
  0x32   : > { %274 = vperm.xlu1 %431, %v179_v10  }
  0x33   : > { %268 = vperm.xlu0 %430, %v177_v11  }
  0x36   : > { %277 = vperm.xlu1 %431, %v180_v12  }
  0x3a   : > { %280 = vperm.xlu1 %431, %v181_v13  }
  0x3e   : > { %283 = vperm.xlu1 %431, %v182_v14  }
  0x42   : > { %286 = vperm.xlu1 %431, %v183_v15  }
  0x46   : > { %289 = vperm.xlu1 %431, %v184_v16  }
  0x9e   : > { %v530_v17 = vpop.xlane.xlu1 %189  ;;  %v532_v18 = vpop.xlane.xlu0 %185 }
  0x9f   : > { %v201_v19 = vsub.f32 %v504_v2, %v532_v18  ;;  %v203_v25 = vsub.f32 %v502_v1, %v530_v17 }
  0xa1   : > { %v209_v20 = vmul.f32 1.442695, %v201_v19  ;;  %v213_v32 = vmul.f32 1.442695, %v203_v25 }
  0xa2   : > { %v536_v21 = vpop.xlane.xlu1 %191  ;;  %v538_v22 = vpop.xlane.xlu0 %187 }
  0xa3   : > { %v204_v23 = vsub.f32 %v508_v3, %v536_v21  ;;  %v202_v24 = vsub.f32 %v510_v4, %v538_v22  ;;  %432 = vpow2.f32 %v209_v20 }
  0xa5   : > { %v215_v26 = vmul.f32 1.442695, %v204_v23  ;;  %v211_v27 = vmul.f32 1.442695, %v202_v24 }
  0xa6   : > { %v546_v28 = vpop.xlane.xlu1 %195  ;;  %v548_v29 = vpop.xlane.xlu0 %193 }
  0xa7   : > { %434 = vpow2.f32 %v215_v26  ;;  %v206_v30 = vsub.f32 %v514_v5, %v546_v28  ;;  %v205_v31 = vsub.f32 %v516_v6, %v548_v29 }
  0xa8   : > { %436 = vpow2.f32 %v211_v27 }
  0xa9   : > { %v219_v33 = vmul.f32 1.442695, %v206_v30  ;;  %v217_v35 = vmul.f32 1.442695, %v205_v31 }
  0xaa   : > { %v554_v34 = vpop.xlane.xlu1 %199  ;;  %v556_v36 = vpop.xlane.xlu0 %197 }
  0xab   : > { %438 = vpow2.f32 %v219_v33  ;;  %v208_v37 = vsub.f32 %v520_v7, %v554_v34  ;;  %v207_v38 = vsub.f32 %v522_v8, %v556_v36 }
  0xac   : > { %440 = vpow2.f32 %v213_v32 }
  0xad   : > { %v223_v39 = vmul.f32 1.442695, %v208_v37  ;;  %v433_v40 = vpop.eup %432  ;;  %442 = vpow2.f32 %v217_v35  ;;  %v221_v42 = vmul.f32 1.442695, %v207_v38 }
  0xae   : > { %v272_v41 = vpop.permute.xlu1 %271  ;;  %225 = vadd.xlane.f32.xlu1 %v433_v40 }
  0xaf   : > { %444 = vpow2.f32 %v223_v39  ;;  %vm292_vm0 = vcmp.eq.s32.totalorder %v266_v50, %v272_v41 }
  0xb0   : > { %446 = vpow2.f32 %v221_v42  ;;  %v300_v57 = vsel %vm292_vm0, %v510_v4, 0.0 }
  0xb1   : > { %v435_v43 = vpop.eup %434 }
  0xb2   : > { %v437_v44 = vpop.eup %436  ;;  %v275_v45 = vpop.permute.xlu1 %274  ;;  %231 = vadd.xlane.f32.xlu1 %v435_v43 }
  0xb3   : > { %227 = vadd.xlane.f32.xlu0 %v437_v44  ;;  %v269_v54 = vpop.permute.xlu0 %268  ;;  %vm293_vm3 = vcmp.eq.s32.totalorder %v266_v50, %v275_v45 }
  0xb4   : > { %vm291_vm1 = vcmp.eq.s32.totalorder %v266_v50, %v269_v54  ;;  %v301_v63 = vsel %vm293_vm3, %v502_v1, 0.0 }
  0xb5   : > { %v439_v47 = vpop.eup %438  ;;  %v299_v58 = vsel %vm291_vm1, %v504_v2, 0.0 }
  0xb6   : > { %v441_v48 = vpop.eup %440  ;;  %v278_v49 = vpop.permute.xlu1 %277  ;;  %235 = vadd.xlane.f32.xlu1 %v439_v47 }
  0xb7   : > { %229 = vadd.xlane.f32.xlu0 %v441_v48  ;;  %v443_v51 = vpop.eup %442  ;;  %vm294_vm2 = vcmp.eq.s32.totalorder %v266_v50, %v278_v49 }
  0xb8   : > { %v302_v60 = vsel %vm294_vm2, %v508_v3, 0.0 }
  0xb9   : > { %v445_v52 = vpop.eup %444 }
  0xba   : > { %v281_v53 = vpop.permute.xlu1 %280  ;;  %239 = vadd.xlane.f32.xlu1 %v445_v52  ;;  %v447_v55 = vpop.eup %446 }
  0xbb   : > { %233 = vadd.xlane.f32.xlu0 %v443_v51  ;;  %vm295_vm5 = vcmp.eq.s32.totalorder %v266_v50, %v281_v53 }
  0xbc   : > { %v303_v2 = vsel %vm295_vm5, %v516_v6, 0.0 }
  0xbe   : > { %v284_v56 = vpop.permute.xlu1 %283  ;;  %309 = vadd.xlane.f32.xlu1 %v300_v57 }
  0xbf   : > { %237 = vadd.xlane.f32.xlu0 %v447_v55  ;;  %vm296_vm4 = vcmp.eq.s32.totalorder %v266_v50, %v284_v56 }
  0xc0   : > { %v304_v62 = vsel %vm296_vm4, %v514_v5, 0.0 }
  0xc2   : > { %v287_v59 = vpop.permute.xlu1 %286  ;;  %313 = vadd.xlane.f32.xlu1 %v302_v60 }
  0xc3   : > { %307 = vadd.xlane.f32.xlu0 %v299_v58  ;;  %vm297_vm7 = vcmp.eq.s32.totalorder %v266_v50, %v287_v59 }
  0xc4   : > { %v305_v3 = vsel %vm297_vm7, %v522_v8, 0.0 }
  0xc6   : > { %v290_v61 = vpop.permute.xlu1 %289  ;;  %317 = vadd.xlane.f32.xlu1 %v304_v62 }
  0xc7   : > { %vm298_vm6 = vcmp.eq.s32.totalorder %v266_v50, %v290_v61  ;;  %311 = vadd.xlane.f32.xlu0 %v301_v63 }
  0xc8   : > { %v306_v0 = vsel %vm298_vm6, %v520_v7, 0.0 }
  0xca   : > { %321 = vadd.xlane.f32.xlu1 %v306_v0 }
  0xcb   : > { %315 = vadd.xlane.f32.xlu0 %v303_v2 }
  0xcf   : > { %319 = vadd.xlane.f32.xlu0 %v305_v3 }
 0x13b   : > { %v226_v4 = vpop.xlane.xlu1 %225 }
 0x13c   : > { %448 = vlog2.f32 %v226_v4 }
 0x13f   : > { %v232_v9 = vpop.xlane.xlu1 %231 }
 0x140   : > { %v228_v5 = vpop.xlane.xlu0 %227  ;;  %450 = vlog2.f32 %v232_v9 }
 0x141   : > { %452 = vlog2.f32 %v228_v5 }
 0x143   : > { %v236_v1 = vpop.xlane.xlu1 %235 }
 0x144   : > { %v230_v10 = vpop.xlane.xlu0 %229  ;;  %454 = vlog2.f32 %v236_v1 }
 0x145   : > { %456 = vlog2.f32 %v230_v10 }
 0x146   : > { %v449_v11 = vpop.eup %448 }
 0x147   : > { %v240_v7 = vpop.xlane.xlu1 %239  ;;  %v242_v13 = vmul.f32 0.6931472, %v449_v11 }
 0x148   : > { %v234_v12 = vpop.xlane.xlu0 %233  ;;  %458 = vlog2.f32 %v240_v7 }
 0x149   : > { %460 = vlog2.f32 %v234_v12  ;;  %v257_v25 = vadd.f32 %v242_v13, %v532_v18 }
 0x14a   : > { %v451_v6 = vpop.eup %450 }
 0x14b   : > { %v453_v8 = vpop.eup %452  ;;  %v248_v14 = vmul.f32 0.6931472, %v451_v6  ;;  %v310_v15 = vpop.xlane.xlu1 %309 }
 0x14c   : > { %v238_v16 = vpop.xlane.xlu0 %237  ;;  %v244_v19 = vmul.f32 0.6931472, %v453_v8 }
 0x14d   : > { %462 = vlog2.f32 %v238_v16  ;;  %v260_v20 = vadd.f32 %v248_v14, %v536_v21 }
 0x14e   : > { %v455_v23 = vpop.eup %454  ;;  %v258_v24 = vadd.f32 %v244_v19, %v538_v22 }
 0x14f   : > { %v457_v26 = vpop.eup %456  ;;  %v252_v27 = vmul.f32 0.6931472, %v455_v23  ;;  %v314_v30 = vpop.xlane.xlu1 %313 }
 0x150   : > { %v308_v31 = vpop.xlane.xlu0 %307  ;;  %v246_v32 = vmul.f32 0.6931472, %v457_v26  ;;  %v324_v21 = vsub.f32 %v258_v24, %v310_v15  ;;  %v326_v33 = vsub.f32 %v260_v20, %v314_v30 }
 0x151   : > { %v323_v35 = vsub.f32 %v257_v25, %v308_v31  ;;  %v262_v18 = vadd.f32 %v252_v27, %v546_v28 }
 0x152   : > { %v459_v22 = vpop.eup %458  ;;  %333 = vst.msk [vmem:[%s577_s21 + $0x8] sm:$0xff] %vm331_vm8, %v324_v21  ;;  %335 = vst.msk [vmem:[%s577_s21 + $0x18] sm:$0xff] %vm331_vm8, %v326_v33  ;;  %v259_v37 = vadd.f32 %v246_v32, %v530_v17 }
 0x153   : > { %332 = vst.msk [vmem:[%s577_s21] sm:$0xff] %vm331_vm8, %v323_v35  ;;  %v461_v38 = vpop.eup %460  ;;  %v256_v39 = vmul.f32 0.6931472, %v459_v22  ;;  %v318_v40 = vpop.xlane.xlu1 %317 }
 0x154   : > { %v312_v41 = vpop.xlane.xlu0 %311  ;;  %v250_v42 = vmul.f32 0.6931472, %v461_v38  ;;  %v328_v43 = vsub.f32 %v262_v18, %v318_v40 }
 0x155   : > { %v325_v44 = vsub.f32 %v259_v37, %v312_v41  ;;  %v264_v28 = vadd.f32 %v256_v39, %v554_v34 }
 0x156   : > { %337 = vst.msk [vmem:[%s577_s21 + $0x28] sm:$0xff] %vm331_vm8, %v328_v43  ;;  %v261_v46 = vadd.f32 %v250_v42, %v548_v29 }
 0x157   : > { %v463_v45 = vpop.eup %462  ;;  %334 = vst.msk [vmem:[%s577_s21 + $0x10] sm:$0xff] %vm331_vm8, %v325_v44  ;;  %v322_v47 = vpop.xlane.xlu1 %321 }
 0x158   : > { %v254_v17 = vmul.f32 0.6931472, %v463_v45  ;;  %v316_v48 = vpop.xlane.xlu0 %315  ;;  %v330_v49 = vsub.f32 %v264_v28, %v322_v47 }
 0x159   : > { %v327_v50 = vsub.f32 %v261_v46, %v316_v48 }
 0x15a   : > { %v263_v51 = vadd.f32 %v254_v17, %v556_v36  ;;  %339 = vst.msk [vmem:[%s577_s21 + $0x38] sm:$0xff] %vm331_vm8, %v330_v49 }
 0x15b   : > { %336 = vst.msk [vmem:[%s577_s21 + $0x20] sm:$0xff] %vm331_vm8, %v327_v50 }
 0x15c   : > { %v320_v52 = vpop.xlane.xlu0 %319 }
 0x15d   : > { %v329_v34 = vsub.f32 %v263_v51, %v320_v52 }
 0x15f   : > { %338 = vst.msk [vmem:[%s577_s21 + $0x30] sm:$0xff] %vm331_vm8, %v329_v34 }
 0x160 PF: > { %s12_s9 = sadd.s32 1, %s470_s9  }
 0x161   : > { %p9_p4 = scmp.ge.s32.totalorder %s12_s9, 4  }
 0x163   :  { %11 = sbr.rel (!%p9_p4) target bundleno = 1 (0x1), region = 61 }

</bundles_post_ra>
